<compile_context>
chip_gen: v7x
topology: tpu7x:2x2x1
jax: 0.10.0
libtpu: 0.0.40
codegen_flags: <defaults>
</compile_context>

<pallas_src>
import jax
import jax.numpy as jnp
from jax.experimental import pallas as pl
from jax.experimental.pallas import tpu as pltpu

_LANE = 128


def _round_up(x, m):
    return ((x + m - 1) // m) * m


def mlp_kernel(u_ref, it_ref, w1u_ref, w1i_ref, w2_ref, w3_ref, wo_ref,
               b1_ref, b2_ref, b3_ref, bo_ref, out_ref):
    """One batch tile, batch-on-lanes: every activation is (features, tb)."""
    f32 = jnp.float32
    wdt = w2_ref.dtype     # bf16 when in_dtype=bfloat16, else f32

    # fc1:  W1^T @ concat([u, it])^T  ==  W1u^T @ u^T + W1i^T @ it^T
    h = (jnp.dot(w1u_ref[...], u_ref[...], preferred_element_type=f32)
         + jnp.dot(w1i_ref[...], it_ref[...], preferred_element_type=f32)
         + b1_ref[...])                             # (L1, 1) lane-broadcast
    h = jnp.maximum(h, 0.0)                         # (L1, tb)

    # fc2
    h = jnp.dot(w2_ref[...], h.astype(wdt),
                preferred_element_type=f32) + b2_ref[...]
    h = jnp.maximum(h, 0.0)                         # (L2, tb)

    # fc3
    h = jnp.dot(w3_ref[...], h.astype(wdt),
                preferred_element_type=f32) + b3_ref[...]
    h = jnp.maximum(h, 0.0)                         # (L3, tb)

    # affine head: (1, L3) @ (L3, tb) -> (1, tb), lane-dense store
    logits = jnp.dot(wo_ref[...], h.astype(wdt),
                     preferred_element_type=f32) + bo_ref[...]
    out_ref[...] = jax.nn.sigmoid(logits).astype(out_ref.dtype)


def mlp_forward(user_indices, item_indices, params, *, block_b=2048,
                in_dtype=jnp.float32):
    """Module forward: gather (transposed) in JAX, fused MLP in one Pallas kernel."""
    emb_user, emb_item = params["emb_user"], params["emb_item"]
    E = emb_user.shape[1]
    B = user_indices.shape[0]

    # Gather directly into the batch-on-lanes layout: (E, B).
    u_t = jnp.take(emb_user.T, user_indices, axis=1).astype(in_dtype)
    it_t = jnp.take(emb_item.T, item_indices, axis=1).astype(in_dtype)

    w1, w2, w3, wo = params["w1"], params["w2"], params["w3"], params["wo"]
    b1, b2, b3, bo = params["b1"], params["b2"], params["b3"], params["bo"]

    # Transposed (and, for bf16, cast) weights: pure in_dtype x in_dtype MXU ops.
    w1u_t = w1[:E].T.astype(in_dtype)               # (L1, E)
    w1i_t = w1[E:].T.astype(in_dtype)               # (L1, E)
    w2_t = w2.T.astype(in_dtype)                    # (L2, L1)
    w3_t = w3.T.astype(in_dtype)                    # (L3, L2)
    wo_t = wo.T.astype(in_dtype)                    # (1, L3)
    b1_t = b1.reshape(-1, 1).astype(jnp.float32)    # (L1, 1)
    b2_t = b2.reshape(-1, 1).astype(jnp.float32)
    b3_t = b3.reshape(-1, 1).astype(jnp.float32)
    bo_t = bo.reshape(-1, 1).astype(jnp.float32)

    # Batch tiling on the lane axis: tb multiple of 128; keep >= 2 grid steps
    # when the batch allows (v7x has 2 TensorCores splitting the parallel axis).
    block_b = max(_LANE, (int(block_b) // _LANE) * _LANE)
    B_ceil = _round_up(B, _LANE)
    tb = min(block_b, B_ceil)
    if B_ceil >= 2 * _LANE:
        tb = min(tb, max(_LANE, (B_ceil // 2) // _LANE * _LANE))
    B_pad = _round_up(B, tb)
    if B_pad != B:
        u_t = jnp.pad(u_t, ((0, 0), (0, B_pad - B)))
        it_t = jnp.pad(it_t, ((0, 0), (0, B_pad - B)))
    n_tiles = B_pad // tb

    def const_spec(a):
        return pl.BlockSpec(a.shape, lambda i: (0,) * a.ndim)

    out = pl.pallas_call(
        mlp_kernel,
        out_shape=jax.ShapeDtypeStruct((1, B_pad), jnp.float32),
        grid=(n_tiles,),
        in_specs=[
            pl.BlockSpec((E, tb), lambda i: (0, i)),   # user-embedding tile (E, tb)
            pl.BlockSpec((E, tb), lambda i: (0, i)),   # item-embedding tile (E, tb)
            const_spec(w1u_t), const_spec(w1i_t), const_spec(w2_t),
            const_spec(w3_t), const_spec(wo_t),
            const_spec(b1_t), const_spec(b2_t), const_spec(b3_t),
            const_spec(bo_t),
        ],
        out_specs=pl.BlockSpec((1, tb), lambda i: (0, i)),
        compiler_params=pltpu.CompilerParams(
            dimension_semantics=("parallel",)),
    )(u_t, it_t, w1u_t, w1i_t, w2_t, w3_t, wo_t, b1_t, b2_t, b3_t, bo_t)

    # (1, B_pad) lane-major result -> (B, 1)
    return out[0, :B].reshape(B, 1)


def reference_forward(user_indices, item_indices, params):
    u = jnp.take(params["emb_user"], user_indices, axis=0)
    it = jnp.take(params["emb_item"], item_indices, axis=0)
    v = jnp.concatenate([u, it], axis=-1)
    for li in (1, 2, 3):
        v = jnp.maximum(v @ params[f"w{li}"] + params[f"b{li}"], 0.0)
    return jax.nn.sigmoid(v @ params["wo"] + params["bo"])


def init_params(key, n_users, n_items, emb_dim, layers):
    """Deterministic synthetic parameters (shapes match the torch module)."""
    sizes = [emb_dim * 2] + layers          # e.g. [32, 32, 16, 8]
    keys = jax.random.split(key, 2 + 2 * len(layers) + 2)
    p = {}
    p["emb_user"] = jax.random.normal(keys[0], (n_users, emb_dim), jnp.float32) * 0.1
    p["emb_item"] = jax.random.normal(keys[1], (n_items, emb_dim), jnp.float32) * 0.1
    ki = 2
    for li, (fi, fo) in enumerate(zip(sizes[:-1], sizes[1:]), start=1):
        scale = 1.0 / jnp.sqrt(fi)
        p[f"w{li}"] = jax.random.uniform(keys[ki], (fi, fo), jnp.float32, -scale, scale)
        p[f"b{li}"] = jax.random.uniform(keys[ki + 1], (1, fo), jnp.float32, -scale, scale)
        ki += 2
    scale = 1.0 / jnp.sqrt(sizes[-1])
    p["wo"] = jax.random.uniform(keys[ki], (sizes[-1], 1), jnp.float32, -scale, scale)
    p["bo"] = jax.random.uniform(keys[ki + 1], (1, 1), jnp.float32, -scale, scale)
    return p


if __name__ == "__main__":
    key = jax.random.PRNGKey(0)
    config = {"n_users": 64, "n_items": 128, "emb_dim": 16, "layers": [32, 16, 8]}

    pkey, ukey, ikey, u2key, i2key = jax.random.split(key, 5)
    params = init_params(pkey, config["n_users"], config["n_items"],
                         config["emb_dim"], config["layers"])

    # Small batch (single 128-lane tile, padded).
    B = 8
    user_idx = jax.random.randint(ukey, (B,), 0, config["n_users"], jnp.int32)
    item_idx = jax.random.randint(ikey, (B,), 0, config["n_items"], jnp.int32)
    rating = jax.block_until_ready(mlp_forward(user_idx, item_idx, params))
    ref = reference_forward(user_idx, item_idx, params)
    assert rating.shape == (B, 1)
    assert jnp.allclose(rating, ref, atol=1e-5, rtol=1e-5)

    # Multi-tile batch with padding (exercises grid + n_tiles>=2 tile cap).
    B2 = 300
    user_idx2 = jax.random.randint(u2key, (B2,), 0, config["n_users"], jnp.int32)
    item_idx2 = jax.random.randint(i2key, (B2,), 0, config["n_items"], jnp.int32)
    rating2 = jax.block_until_ready(
        mlp_forward(user_idx2, item_idx2, params, block_b=256))
    ref2 = reference_forward(user_idx2, item_idx2, params)
    assert rating2.shape == (B2, 1)
    assert jnp.allclose(rating2, ref2, atol=1e-5, rtol=1e-5)

    # Default (large-tile) config on the same batch.
    rating2b = jax.block_until_ready(mlp_forward(user_idx2, item_idx2, params))
    assert jnp.allclose(rating2b, ref2, atol=1e-5, rtol=1e-5)

    # bfloat16 path: bf16 embeddings AND bf16 weights -> native bf16 MXU ops.
    rating_bf16 = jax.block_until_ready(
        mlp_forward(user_idx2, item_idx2, params, block_b=256,
                    in_dtype=jnp.bfloat16))
    assert rating_bf16.shape == (B2, 1)
    assert jnp.allclose(rating_bf16, ref2, atol=5e-2)

    print("KERNEL_OK")
</pallas_src>

<mosaic_0001>
module attributes {stable_mosaic.version = 11 : i64} {
  func.func @mlp_kernel(%arg0: i32, %arg1: memref<16x128xf32, #tpu.memory_space<vmem>>, %arg2: memref<16x128xf32, #tpu.memory_space<vmem>>, %arg3: memref<32x16xf32, #tpu.memory_space<vmem>>, %arg4: memref<32x16xf32, #tpu.memory_space<vmem>>, %arg5: memref<16x32xf32, #tpu.memory_space<vmem>>, %arg6: memref<8x16xf32, #tpu.memory_space<vmem>>, %arg7: memref<1x8xf32, #tpu.memory_space<vmem>>, %arg8: memref<32x1xf32, #tpu.memory_space<vmem>>, %arg9: memref<16x1xf32, #tpu.memory_space<vmem>>, %arg10: memref<8x1xf32, #tpu.memory_space<vmem>>, %arg11: memref<1x1xf32, #tpu.memory_space<vmem>>, %arg12: memref<1x128xf32, #tpu.memory_space<vmem>>) attributes {dimension_semantics = [#tpu.dimension_semantics<parallel>], iteration_bounds = array<i64: 1>, scalar_prefetch = 0 : i64, scratch_operands = 0 : i64, tpu.core_type = #tpu.core_type<tc>, window_params = [{transform_indices = @transform_0, window_bounds = array<i64: 16, 128>}, {transform_indices = @transform_1, window_bounds = array<i64: 16, 128>}, {pipeline_mode = #tpu.pipeline_mode<synchronous>, transform_indices = @transform_2, window_bounds = array<i64: 32, 16>}, {pipeline_mode = #tpu.pipeline_mode<synchronous>, transform_indices = @transform_3, window_bounds = array<i64: 32, 16>}, {pipeline_mode = #tpu.pipeline_mode<synchronous>, transform_indices = @transform_4, window_bounds = array<i64: 16, 32>}, {pipeline_mode = #tpu.pipeline_mode<synchronous>, transform_indices = @transform_5, window_bounds = array<i64: 8, 16>}, {pipeline_mode = #tpu.pipeline_mode<synchronous>, transform_indices = @transform_6, window_bounds = array<i64: 1, 8>}, {pipeline_mode = #tpu.pipeline_mode<synchronous>, transform_indices = @transform_7, window_bounds = array<i64: 32, 1>}, {pipeline_mode = #tpu.pipeline_mode<synchronous>, transform_indices = @transform_8, window_bounds = array<i64: 16, 1>}, {pipeline_mode = #tpu.pipeline_mode<synchronous>, transform_indices = @transform_9, window_bounds = array<i64: 8, 1>}, {pipeline_mode = #tpu.pipeline_mode<synchronous>, transform_indices = @transform_10, window_bounds = array<i64: 1, 1>}, {transform_indices = @transform_11, window_bounds = array<i64: 1, 128>}]} {
    %c0 = arith.constant 0 : index
    %c0_0 = arith.constant 0 : index
    %0 = vector.load %arg3[%c0, %c0_0] : memref<32x16xf32, #tpu.memory_space<vmem>>, vector<32x16xf32>
    %c0_1 = arith.constant 0 : index
    %c0_2 = arith.constant 0 : index
    %1 = vector.load %arg1[%c0_1, %c0_2] : memref<16x128xf32, #tpu.memory_space<vmem>>, vector<16x128xf32>
    %cst = arith.constant dense<0.000000e+00> : vector<32x128xf32>
    %2 = tpu.matmul %0, %1, %cst {dimension_numbers = #tpu.dot_dimension_numbers<[1], [0], [0], [1], [0, 0, 1, 1], [], []>} : vector<32x16xf32>, vector<16x128xf32>, vector<32x128xf32> -> vector<32x128xf32>
    %c0_3 = arith.constant 0 : index
    %c0_4 = arith.constant 0 : index
    %3 = vector.load %arg4[%c0_3, %c0_4] : memref<32x16xf32, #tpu.memory_space<vmem>>, vector<32x16xf32>
    %c0_5 = arith.constant 0 : index
    %c0_6 = arith.constant 0 : index
    %4 = vector.load %arg2[%c0_5, %c0_6] : memref<16x128xf32, #tpu.memory_space<vmem>>, vector<16x128xf32>
    %cst_7 = arith.constant dense<0.000000e+00> : vector<32x128xf32>
    %5 = tpu.matmul %3, %4, %cst_7 {dimension_numbers = #tpu.dot_dimension_numbers<[1], [0], [0], [1], [0, 0, 1, 1], [], []>} : vector<32x16xf32>, vector<16x128xf32>, vector<32x128xf32> -> vector<32x128xf32>
    %6 = arith.addf %2, %5 : vector<32x128xf32>
    %c0_8 = arith.constant 0 : index
    %c0_9 = arith.constant 0 : index
    %7 = vector.load %arg8[%c0_8, %c0_9] : memref<32x1xf32, #tpu.memory_space<vmem>>, vector<32x1xf32>
    %8 = vector.broadcast %7 : vector<32x1xf32> to vector<32x128xf32>
    %9 = arith.addf %6, %8 : vector<32x128xf32>
    %cst_10 = arith.constant 0.000000e+00 : f32
    %10 = vector.broadcast %cst_10 : f32 to vector<32x128xf32>
    %11 = arith.maximumf %9, %10 : vector<32x128xf32>
    %c0_11 = arith.constant 0 : index
    %c0_12 = arith.constant 0 : index
    %12 = vector.load %arg5[%c0_11, %c0_12] : memref<16x32xf32, #tpu.memory_space<vmem>>, vector<16x32xf32>
    %cst_13 = arith.constant dense<0.000000e+00> : vector<16x128xf32>
    %13 = tpu.matmul %12, %11, %cst_13 {dimension_numbers = #tpu.dot_dimension_numbers<[1], [0], [0], [1], [0, 0, 1, 1], [], []>} : vector<16x32xf32>, vector<32x128xf32>, vector<16x128xf32> -> vector<16x128xf32>
    %c0_14 = arith.constant 0 : index
    %c0_15 = arith.constant 0 : index
    %14 = vector.load %arg9[%c0_14, %c0_15] : memref<16x1xf32, #tpu.memory_space<vmem>>, vector<16x1xf32>
    %15 = vector.broadcast %14 : vector<16x1xf32> to vector<16x128xf32>
    %16 = arith.addf %13, %15 : vector<16x128xf32>
    %cst_16 = arith.constant 0.000000e+00 : f32
    %17 = vector.broadcast %cst_16 : f32 to vector<16x128xf32>
    %18 = arith.maximumf %16, %17 : vector<16x128xf32>
    %c0_17 = arith.constant 0 : index
    %c0_18 = arith.constant 0 : index
    %19 = vector.load %arg6[%c0_17, %c0_18] : memref<8x16xf32, #tpu.memory_space<vmem>>, vector<8x16xf32>
    %cst_19 = arith.constant dense<0.000000e+00> : vector<8x128xf32>
    %20 = tpu.matmul %19, %18, %cst_19 {dimension_numbers = #tpu.dot_dimension_numbers<[1], [0], [0], [1], [0, 0, 1, 1], [], []>} : vector<8x16xf32>, vector<16x128xf32>, vector<8x128xf32> -> vector<8x128xf32>
    %c0_20 = arith.constant 0 : index
    %c0_21 = arith.constant 0 : index
    %21 = vector.load %arg10[%c0_20, %c0_21] : memref<8x1xf32, #tpu.memory_space<vmem>>, vector<8x1xf32>
    %22 = vector.broadcast %21 : vector<8x1xf32> to vector<8x128xf32>
    %23 = arith.addf %20, %22 : vector<8x128xf32>
    %cst_22 = arith.constant 0.000000e+00 : f32
    %24 = vector.broadcast %cst_22 : f32 to vector<8x128xf32>
    %25 = arith.maximumf %23, %24 : vector<8x128xf32>
    %c0_23 = arith.constant 0 : index
    %c0_24 = arith.constant 0 : index
    %26 = vector.load %arg7[%c0_23, %c0_24] : memref<1x8xf32, #tpu.memory_space<vmem>>, vector<1x8xf32>
    %cst_25 = arith.constant dense<0.000000e+00> : vector<1x128xf32>
    %27 = tpu.matmul %26, %25, %cst_25 {dimension_numbers = #tpu.dot_dimension_numbers<[1], [0], [0], [1], [0, 0, 1, 1], [], []>} : vector<1x8xf32>, vector<8x128xf32>, vector<1x128xf32> -> vector<1x128xf32>
    %c0_26 = arith.constant 0 : index
    %c0_27 = arith.constant 0 : index
    %28 = vector.load %arg11[%c0_26, %c0_27] : memref<1x1xf32, #tpu.memory_space<vmem>>, vector<1x1xf32>
    %29 = vector.broadcast %28 : vector<1x1xf32> to vector<1x128xf32>
    %30 = arith.addf %27, %29 : vector<1x128xf32>
    %31 = arith.negf %30 : vector<1x128xf32>
    %32 = math.exp %31 : vector<1x128xf32>
    %cst_28 = arith.constant 1.000000e+00 : f32
    %33 = vector.broadcast %cst_28 : f32 to vector<1x128xf32>
    %34 = arith.addf %33, %32 : vector<1x128xf32>
    %35 = arith.divf %33, %34 : vector<1x128xf32>
    %c0_29 = arith.constant 0 : index
    %c0_30 = arith.constant 0 : index
    %36 = vector.load %arg12[%c0_29, %c0_30] : memref<1x128xf32, #tpu.memory_space<vmem>>, vector<1x128xf32>
    tpu.vector_store %arg12[%c0_29, %c0_30], %35 {strides = array<i32>} : memref<1x128xf32, #tpu.memory_space<vmem>>, vector<1x128xf32>,
    return
  }
  func.func @transform_0(%arg0: i32) -> (i32, i32) {
    %c0_i32 = arith.constant 0 : i32
    %c0_i32_0 = arith.constant 0 : i32
    return %c0_i32, %arg0 : i32, i32
  }
  func.func @transform_1(%arg0: i32) -> (i32, i32) {
    %c0_i32 = arith.constant 0 : i32
    %c0_i32_0 = arith.constant 0 : i32
    return %c0_i32, %arg0 : i32, i32
  }
  func.func @transform_2(%arg0: i32) -> (i32, i32) {
    %c0_i32 = arith.constant 0 : i32
    %c0_i32_0 = arith.constant 0 : i32
    %c0_i32_1 = arith.constant 0 : i32
    return %c0_i32, %c0_i32_0 : i32, i32
  }
  func.func @transform_3(%arg0: i32) -> (i32, i32) {
    %c0_i32 = arith.constant 0 : i32
    %c0_i32_0 = arith.constant 0 : i32
    %c0_i32_1 = arith.constant 0 : i32
    return %c0_i32, %c0_i32_0 : i32, i32
  }
  func.func @transform_4(%arg0: i32) -> (i32, i32) {
    %c0_i32 = arith.constant 0 : i32
    %c0_i32_0 = arith.constant 0 : i32
    %c0_i32_1 = arith.constant 0 : i32
    return %c0_i32, %c0_i32_0 : i32, i32
  }
  func.func @transform_5(%arg0: i32) -> (i32, i32) {
    %c0_i32 = arith.constant 0 : i32
    %c0_i32_0 = arith.constant 0 : i32
    %c0_i32_1 = arith.constant 0 : i32
    return %c0_i32, %c0_i32_0 : i32, i32
  }
  func.func @transform_6(%arg0: i32) -> (i32, i32) {
    %c0_i32 = arith.constant 0 : i32
    %c0_i32_0 = arith.constant 0 : i32
    %c0_i32_1 = arith.constant 0 : i32
    return %c0_i32, %c0_i32_0 : i32, i32
  }
  func.func @transform_7(%arg0: i32) -> (i32, i32) {
    %c0_i32 = arith.constant 0 : i32
    %c0_i32_0 = arith.constant 0 : i32
    %c0_i32_1 = arith.constant 0 : i32
    return %c0_i32, %c0_i32_0 : i32, i32
  }
  func.func @transform_8(%arg0: i32) -> (i32, i32) {
    %c0_i32 = arith.constant 0 : i32
    %c0_i32_0 = arith.constant 0 : i32
    %c0_i32_1 = arith.constant 0 : i32
    return %c0_i32, %c0_i32_0 : i32, i32
  }
  func.func @transform_9(%arg0: i32) -> (i32, i32) {
    %c0_i32 = arith.constant 0 : i32
    %c0_i32_0 = arith.constant 0 : i32
    %c0_i32_1 = arith.constant 0 : i32
    return %c0_i32, %c0_i32_0 : i32, i32
  }
  func.func @transform_10(%arg0: i32) -> (i32, i32) {
    %c0_i32 = arith.constant 0 : i32
    %c0_i32_0 = arith.constant 0 : i32
    %c0_i32_1 = arith.constant 0 : i32
    return %c0_i32, %c0_i32_0 : i32, i32
  }
  func.func @transform_11(%arg0: i32) -> (i32, i32) {
    %c0_i32 = arith.constant 0 : i32
    %c0_i32_0 = arith.constant 0 : i32
    return %c0_i32, %arg0 : i32, i32
  }
}

</mosaic_0001>

<bundles_post_ra>
// kernel: tpu_custom_call.1
= control target key start
LH: loop header
LB: loop body
LE: loop exit
PB: predicated region body
PF: predicated region fallthrough
CT: control target
= control target key end

     0   :  { %s864_s0 = inlined_call_operand.vmem [shape: f32[16,128], index: 0, kind: input, shape index: {}]   ;;  %s865_s1 = inlined_call_operand.vmem [shape: f32[16,128], index: 1, kind: input, shape index: {}]   ;;  %s866_s2 = inlined_call_operand.vmem [shape: f32[32,16], index: 2, kind: input, shape index: {}]   ;;  %s867_s3 = inlined_call_operand.vmem [shape: f32[32,16], index: 3, kind: input, shape index: {}]   ;;  %s868_s4 = inlined_call_operand.vmem [shape: f32[16,32], index: 4, kind: input, shape index: {}]   ;;  %s869_s5 = inlined_call_operand.vmem [shape: f32[8,16], index: 5, kind: input, shape index: {}]   ;;  %s870_s6 = inlined_call_operand.vmem [shape: f32[1,8], index: 6, kind: input, shape index: {}]   ;;  %s871_s7 = inlined_call_operand.vmem [shape: f32[32,1], index: 7, kind: input, shape index: {}]   ;;  %s872_s8 = inlined_call_operand.vmem [shape: f32[16,1], index: 8, kind: input, shape index: {}]   ;;  %s873_s9 = inlined_call_operand.vmem [shape: f32[8,1], index: 9, kind: input, shape index: {}]   ;;  %s874_s10 = inlined_call_operand.<no memory space> [shape: f32[1,1], index: 10, kind: input, shape index: {}]   ;;  %s875_s11 = inlined_call_operand.hbm [shape: f32[1,128], index: 11, kind: output, shape index: {}]  }
   0x1   :  { %v16_v0 = vstv %s874_s10 }
   0x2   :  { %17 = vst [vmem:[#allocation2] sm:$0x1] %v16_v0 }
   0x3   :  { %v51_v1 = vld [vmem:[%s865_s1] sm:$0xff]  ;;  %v52_v2 = vld [vmem:[%s865_s1 + $0x8] sm:$0xff]  ;;  %vm53_vm0 = vcmask 130048   ;;  %v702_v7 = vmov 0   ;;  %v250_v11 = vld [vmem:[%s871_s7 + $0x10] sm:$0xff] }
   0x4   :  { %v47_v3 = vld [vmem:[%s867_s3] sm:$0xff]  ;;  %v644_v4 = vpack.c.bf16 %v52_v2, %v51_v1  ;;  %v46_v6 = vld [vmem:[%s864_s0 + $0x8] sm:$0xff]  ;;  %672 = vset.pattern.permute.xlu0 %v702_v7  ;;  %673 = vset.pattern.permute.xlu1 %v702_v7  ;;  %v49_v12 = vld [vmem:[%s867_s3 + $0x10] sm:$0xff] }
   0x5   :  { %605 = vmatprep.mubr.msk.f32.mxu0 %vm53_vm0, %v47_v3  ;;  %v45_v5 = vld [vmem:[%s864_s0] sm:$0xff]  ;;  %v48_v9 = vld [vmem:[%s867_s3 + $0x8] sm:$0xff]  ;;  %264 = vperm.xlu1 %673, %v250_v11  }
   0x6   :  { %v648_v8 = vpack.c.bf16 %v46_v6, %v45_v5  ;;  %645 = vmatprep.subr.bf16.mxu0 %v644_v4  ;;  %v248_v10 = vld [vmem:[%s871_s7] sm:$0xff]  ;;  %v249_v13 = vld [vmem:[%s871_s7 + $0x8] sm:$0xff] }
   0x7   :  { %647 = vmatpush3.bf16.msra.mxu0 %v644_v4  ;;  %254 = vperm.xlu0 %672, %v248_v10  }
   0x8   :  { %649 = vmatprep.subr.bf16.mxu0 %v648_v8 }
   0x9   :  { %18 = vsyncpa [#allocation4], 0  ;;  %v251_v14 = vld [vmem:[%s871_s7 + $0x18] sm:$0xff]  ;;  %v41_v16 = vld [vmem:[%s866_s2] sm:$0xff]  ;;  %vm294_vm1 = vcmask 261120   ;;  %v703_v44 = vmov 0.0|0.0   ;;  %v466_v62 = vlaneseq }
   0xa   :  { %606 = vmatmul.mubr.msk.f32.vlgmr.msra.gmra.mrb[0].mxu0 %vm53_vm0, %v48_v9  ;;  %v50_v15 = vld [vmem:[%s867_s3 + $0x18] sm:$0xff]  ;;  %269 = vperm.xlu1 %673, %v251_v14   ;;  %v282_v17 = vld [vmem:[%s872_s8] sm:$0xff]  ;;  %v283_v18 = vld [vmem:[%s872_s8 + $0x8] sm:$0xff]  ;;  %vm704_vm2 = vmmov 0   ;;  %v705_v45 = vmov 0.0   ;;  %vm470_vm3 = vcmask 64512  }
   0xb   :  { %608 = vmatprep.mubr.msk.f32.mxu0 %vm53_vm0, %v49_v12  ;;  %651 = vmatpush3.bf16.msra.mxu0 %v648_v8  ;;  %v42_v19 = vld [vmem:[%s866_s2 + $0x8] sm:$0xff]  ;;  %v43_v20 = vld [vmem:[%s866_s2 + $0x10] sm:$0xff]  ;;  %v379_v21 = vld [vmem:[%s873_s9] sm:$0xff]  ;;  %v467_v63 = vshrl.u32 %v466_v62, 7 }
   0xc   :  { %259 = vperm.xlu0 %672, %v249_v13   ;;  %v460_v22 = vld [vmem:[#allocation2] sm:$0x1]  ;;  %v44_v23 = vld [vmem:[%s866_s2 + $0x18] sm:$0xff]  ;;  %v281_v43 = vld [vmem:[%s868_s4 + $0x8] sm:$0xff] }
   0xd   :  { %v280_v24 = vld [vmem:[%s868_s4] sm:$0xff]  ;;  %v468_v0 = vsub.s32 0, %v467_v63 }
   0xe   :  { %609 = vmatmul.mubr.msk.f32.gmra.mrb[2].mxu0 %vm53_vm0, %v50_v15  ;;  %291 = vperm.xlu1 %673, %v283_v18   ;;  %v378_v55 = vld [vmem:[%s869_s5] sm:$0xff]  ;;  %s706_s5 = smov [#allocation3]  }
   0xf   :  { %615 = vmatprep.mubr.msk.f32.mxu0 %vm53_vm0, %v41_v16  ;;  %629 = vmatprep.mubr.msk.f32.mxu1 %vm294_vm1, %v280_v24  ;;  %v459_v61 = vld [vmem:[%s870_s6] sm:$0x1]  ;;  %s557_s15 = sshll.u32 %s706_s5, 4  ;;  %s558_s15 = int_to_ptr.vmem [resolvable:$true] %s557_s15 }
  0x10   :  { %286 = vperm.xlu0 %672, %v282_v17   ;;  %s678_s6 = scalar_lea.vmem %s558_s15, 16  ;;  %s682_s16 = scalar_lea.vmem %s558_s15, 32 }
  0x11   :  { %p679_p0 = scmp.ne.s32.totalorder %s558_s15, %s678_s6  ;;  %p683_p1 = scmp.lt.s32.totalorder %s558_s15, %s558_s15 }
  0x12   :  { %616 = vmatmul.mubr.msk.f32.vlgmr.msra.gmra.mrb[0].mxu0 %vm53_vm0, %v42_v19  ;;  %463 = vperm.xlu1 %673, %v460_v22   ;;  %p684_p2 = scmp.lt.s32.totalorder %s682_s16, %s678_s6 }
  0x13   :  { %618 = vmatprep.mubr.msk.f32.mxu0 %vm53_vm0, %v43_v20 }
  0x14   :  { %382 = vperm.xlu0 %672, %v379_v21   ;;  %p685_p3 = por %p684_p2, %p683_p1 }
  0x16   :  { %619 = vmatmul.mubr.msk.f32.gmra.mrb[2].mxu0 %vm53_vm0, %v44_v23  ;;  %p686_p4 = pnand %p685_p3, %p679_p0 }
  0x84   :  { %v265_v26 = vpop.permute.xlu1 %264 }
  0x86   :  { %v255_v25 = vpop.permute.xlu0 %254 }
  0x89   :  { %v270_v33 = vpop.permute.xlu1 %269 }
  0x8b   :  { %v260_v27 = vpop.permute.xlu0 %259 }
  0x8d   :  { %v292_v46 = vpop.permute.xlu1 %291 }
  0x8f   :  { %v287_v48 = vpop.permute.xlu0 %286 }
  0x91   :  { %v464_v1 = vpop.permute.xlu1 %463 }
  0x92   :  { %v469_v2 = vrot.slane %v464_v1, %v468_v0 }
  0x93   :  { %v383_v56 = vpop.permute.xlu0 %382 }
  0xe5   :  { %v617_v28 = vpop.f32.mrb[0].mxu0 }
  0xe6   :  { %v273_v29 = vadd.f32 %v617_v28, %v260_v27  ;;  %v229_v30 = vpop.f32.mrb[1].mxu0 }
  0xe7   :  { %v272_v31 = vadd.f32 %v255_v25, %v229_v30 }
  0xe8   :  { %v277_v32 = vmax.f32 %v273_v29, 0.0 }
  0xe9   :  { %v276_v34 = vmax.f32 %v272_v31, 0.0  ;;  %v620_v35 = vpop.f32.mrb[2].mxu0 }
  0xea   :  { %v275_v36 = vadd.f32 %v620_v35, %v270_v33  ;;  %v239_v37 = vpop.f32.mrb[3].mxu0 }
  0xeb   :  { %v274_v38 = vadd.f32 %v265_v26, %v239_v37  ;;  %v652_v39 = vpack.c.bf16 %v277_v32, %v276_v34 }
  0xec   :  { %v279_v40 = vmax.f32 %v275_v36, 0.0 }
  0xed   :  { %v278_v41 = vmax.f32 %v274_v38, 0.0  ;;  %653 = vmatprep.subr.bf16.mxu1 %v652_v39 }
  0xee   :  { %655 = vmatpush3.bf16.msra.mxu1 %v652_v39 }
  0xef   :  { %v656_v42 = vpack.c.bf16 %v279_v40, %v278_v41 }
  0xf1   :  { %657 = vmatprep.subr.bf16.mxu1 %v656_v42 }
  0xf2   :  { %659 = vmatpush3.bf16.msra.mxu1 %v656_v42 }
  0xf3   :  { %660 = vmatprep.subr.bf16.mxu1 %v703_v44 }
  0xf5   :  { %630 = vmatmul.mubr.msk.f32.vlgmr.msra.gmra.mrb[0].mxu1 %vm294_vm1, %v281_v43 }
  0xf6   :  { %636 = vmatprep.mubr.msk.f32.mxu1 %vm704_vm2, %v705_v45 }
 0x1c8   :  { %v631_v47 = vpop.f32.mrb[0].mxu1 }
 0x1c9   :  { %v373_v49 = vadd.f32 %v631_v47, %v292_v46  ;;  %v367_v50 = vpop.f32.mrb[1].mxu1 }
 0x1ca   :  { %v368_v51 = vadd.f32 %v367_v50, %v287_v48 }
 0x1cb   :  { %v377_v52 = vmax.f32 %v373_v49, 0.0 }
 0x1cc   :  { %v376_v53 = vmax.f32 %v368_v51, 0.0 }
 0x1ce   :  { %v661_v54 = vpack.c.bf16 %v377_v52, %v376_v53 }
 0x1d0   :  { %662 = vmatpush3.bf16.msra.mxu1 %v661_v54 }
 0x1d1   :  { %639 = vmatprep.subr.mxu1 %v705_v45 }
 0x1d3   :  { %637 = vmatmul.mubr.msk.f32.vlgmr.msra.gmra.mrb[2].mxu1 %vm53_vm0, %v378_v55 }
 0x1d4   :  { %641 = vmatprep.mubr.msk.f32.mxu1 %vm704_vm2, %v705_v45 }
 0x2a6   :  { %v454_v57 = vpop.f32.mrb[2].mxu1 }
 0x2a7   :  { %v455_v58 = vadd.f32 %v454_v57, %v383_v56  ;;  %v638_v59 = vpop.f32.mrb[3].mxu1 }
 0x2a9   :  { %v458_v60 = vmax.f32 %v455_v58, 0.0 }
 0x2ab   :  { %640 = vmatpush3.msra.mxu1 %v458_v60 }
 0x2ac   :  { %642 = vmatmul.mubr.msk.f32.vlgmr.msra.gmra.mrb[4].mxu1 %vm470_vm3, %v459_v61 }
 0x37f   :  { %v540_v3 = vpop.f32.mrb[4].mxu1 }
 0x380   :  { %v541_v4 = vadd.f32 %v540_v3, %v469_v2  ;;  %v643_v5 = vpop.f32.mrb[5].mxu1 }
 0x382   :  { %v577_v6 = vmul.f32 -1.442695, %v541_v4 }
 0x384   :  { %674 = vpow2.f32 %v577_v6 }
 0x38e   :  { %v675_v7 = vpop.eup %674 }
 0x38f   :  { %v547_v8 = vadd.f32 1.0, %v675_v7 }
 0x391   :  { %676 = vrcp.f32 %v547_v8 }
 0x39b   :  { %v677_v9 = vpop.eup %676 }
 0x39c   :  { %550 = vst [vmem:[#allocation3] sm:$0x1] %v677_v9 }
 0x39d   :  { %689 = shalt.err (!%p686_p4)
}
 0x39e   :  { %s690_s19 = scalar_lea.hbm %s875_s11, 16 }
 0x39f   :  { %p691_p5 = scmp.ne.s32.totalorder %s875_s11, %s690_s19  ;;  %p694_p6 = scmp.lt.u32.totalorder %s690_s19, %s875_s11 }
 0x3a1   :  { %p696_p7 = pnand %p694_p6, %p691_p5 }
 0x3a3   :  { %699 = shalt.err (!%p696_p7)
}
 0x3a4   :  { %560 = dma.vmem_to_hbm [thread:$0]  %s558_s15, 16, %s875_s11, [#allocation4]  }
 0x3a5   :  { %700 = dma.done.wait [#allocation4], 16  }
 0x3a6   :  { %701 = vsyncadd [#allocation4], 4294967280 }
 0x3a7   :  { %564 = vsyncpa [#allocation4], 1 }

</bundles_post_ra>
